<compile_context>
chip_gen: v7x
topology: tpu7x:2x2x1
jax: 0.10.0
libtpu: 0.0.40
codegen_flags: <defaults>
</compile_context>

<pallas_src>
import functools

import jax
import jax.numpy as jnp
from jax.experimental import pallas as pl
from jax.experimental.pallas import tpu as pltpu


def _round_up(x, m):
    return ((x + m - 1) // m) * m


# ----------------------------- Pallas kernel -------------------------------
def ddpg_actor_kernel(n_act, ek_ref, noise_ref, w_ref, bias_ref, out_ref):
    f32, bf16 = jnp.float32, jnp.bfloat16
    batch = out_ref.shape[0]
    d_in = ek_ref.shape[1]          # padded width of [e | k]
    s1 = w_ref.shape[1]             # padded width of [x | y]
    s2 = out_ref.shape[1]           # padded width of [out | z]

    # Static, tile-aligned views into the packed parameter slabs.
    w_a = w_ref[0:d_in, :]                 # (d_in, s1)  blockdiag(W1, W2)
    w_b = w_ref[d_in:d_in + s1, 0:s2]      # (s1, s2)    [[W4x | W5], [W4y | 0]]
    b_a = bias_ref[0:1, 0:s1]              # (1, s1)     [b1 | b2]
    b_b = bias_ref[1:2, 0:s2]              # (1, s2)     [b4 | b5]
    w6r = bias_ref[2:3, 0:s2]              # (1, s2)     fc6 weight in [out | z] order
    b6 = bias_ref[3:4, 0:1]                # (1, 1)

    # stage 1: [x | y] = relu([e | k] @ blockdiag(W1, W2) + [b1 | b2])
    ek = ek_ref[...].astype(bf16)
    h = jnp.dot(ek, w_a, preferred_element_type=f32) + b_a
    h = jnp.maximum(h, 0.0).astype(bf16)                     # (B, s1)

    # stage 2: lanes [0, n_act)        = fc4(cat[x, y])  (pre-noise)
    #          lanes [n_act, 12*n_act) = fc5(x) = z ; remaining lanes are 0.
    s2v = jnp.dot(h, w_b, preferred_element_type=f32) + b_b  # (B, s2)
    full = s2v + noise_ref[...]            # OU noise only occupies lanes [0, n_act)

    # cpu_fre = sigmoid(fc6(cat([z, out]))) as a lane reduction (no N=1 matmul).
    logit = jnp.sum(full * w6r, axis=-1, keepdims=True) + b6
    cpu_fre = jax.nn.sigmoid(logit)        # (B, 1)

    # Numerically stable softmax over the `out` lanes only (masked).
    lane = jax.lax.broadcasted_iota(jnp.int32, (batch, s2), 1)
    masked = jnp.where(lane < n_act, full, -jnp.inf)
    m = jnp.max(masked, axis=-1, keepdims=True)
    p = jnp.exp(masked - m)                # padding lanes -> exp(-inf) = 0
    denom = jnp.sum(p, axis=-1, keepdims=True)
    probs = p * pl.reciprocal(denom, approx=True)

    # One lane-dense store: probs in lanes [0, n_act), cpu_fre in lane n_act.
    out_ref[...] = jnp.where(lane == n_act, cpu_fre, probs)


# ------------------------------- wrapper ------------------------------------
@functools.partial(jax.jit, static_argnames=("n_act",))
def ddpg_actor_forward(e, k, noise, w_slab, bias_slab, *, n_act):
    batch = e.shape[0]
    d_in = e.shape[1] + k.shape[1]
    d_in_pad = _round_up(d_in, 16)                 # bf16 sublane-tile alignment
    s1 = w_slab.shape[1]
    s2 = _round_up(12 * n_act, 128)                # [out | z] lane width

    # Pack per-call activations: one [e|k] slab + a lane-padded noise row.
    ek = jnp.concatenate([e, k], axis=-1)
    if d_in_pad > d_in:
        ek = jnp.pad(ek, ((0, 0), (0, d_in_pad - d_in)))
    noise_pad = jnp.zeros((1, s2), jnp.float32).at[:, :n_act].set(noise)

    cost = pl.CostEstimate(
        flops=2 * batch * (d_in_pad * s1 + s1 * s2) + 8 * batch * s2,
        transcendentals=batch * (s2 + 2),
        bytes_accessed=(w_slab.size * w_slab.dtype.itemsize
                        + bias_slab.size * bias_slab.dtype.itemsize
                        + ek.size * 4 + noise_pad.size * 4 + batch * s2 * 4),
    )

    vmem = pl.BlockSpec(memory_space=pltpu.MemorySpace.VMEM)
    packed = pl.pallas_call(
        functools.partial(ddpg_actor_kernel, n_act),
        out_shape=jax.ShapeDtypeStruct((batch, s2), jnp.float32),
        in_specs=[vmem, vmem, vmem, vmem],
        out_specs=vmem,
        cost_estimate=cost,
    )(ek, noise_pad, w_slab, bias_slab)

    probs = packed[:, :n_act]
    cpu_fre = packed[:, n_act:n_act + 1]
    return probs, cpu_fre


# --------------------------- parameter creation ------------------------------
def init_params(key, neighbors_num, task_em_size):
    """nn.Linear-style init; returns raw f32 weights plus MXU-packed slabs."""
    d_e = neighbors_num * 3 + 3
    d_k = task_em_size
    d_h = 128
    d_y = task_em_size * 3
    n_act = neighbors_num + 1
    d_z = n_act * 11

    d_in = d_e + d_k
    d_in_pad = _round_up(d_in, 16)
    s2 = _round_up(n_act + d_z, 128)               # [out | z] lanes
    s1 = max(_round_up(d_h + d_y, 128), s2)        # [x | y] lanes  (>= s2)

    def linear(key, fan_in, fan_out):
        kw, kb = jax.random.split(key)
        bound = 1.0 / float(fan_in) ** 0.5
        w = jax.random.uniform(kw, (fan_in, fan_out), jnp.float32, -bound, bound)
        b = jax.random.uniform(kb, (fan_out,), jnp.float32, -bound, bound)
        return w, b

    k1, k2, k4, k5, k6 = jax.random.split(key, 5)
    w1, b1 = linear(k1, d_e, d_h)                  # fc1: (24, 128)
    w2, b2 = linear(k2, d_k, d_y)                  # fc2: (8, 24)
    w4, b4 = linear(k4, d_h + d_y, n_act)          # fc4: (152, 8)
    w5, b5 = linear(k5, d_h, d_z)                  # fc5: (128, 88)
    w6, b6 = linear(k6, d_z + n_act, 1)            # fc6: (96, 1)

    # --- stage-1 block-diagonal weight: [e | k] @ W_a = [x_pre | y_pre] ---
    w_a = jnp.zeros((d_in_pad, s1), jnp.float32)
    w_a = w_a.at[:d_e, :d_h].set(w1)
    w_a = w_a.at[d_e:d_in, d_h:d_h + d_y].set(w2)
    b_a = jnp.zeros((s1,), jnp.float32).at[:d_h].set(b1).at[d_h:d_h + d_y].set(b2)

    # --- stage-2 weight: [x | y] @ W_b = [fc4_pre | fc5] ---
    w_b = jnp.zeros((s1, s2), jnp.float32)
    w_b = w_b.at[:d_h, :n_act].set(w4[:d_h])            # x -> out   (w4x)
    w_b = w_b.at[d_h:d_h + d_y, :n_act].set(w4[d_h:])   # y -> out   (w4y)
    w_b = w_b.at[:d_h, n_act:n_act + d_z].set(w5)       # x -> z     (w5)
    b_b = (jnp.zeros((s2,), jnp.float32)
           .at[:n_act].set(b4).at[n_act:n_act + d_z].set(b5))

    # --- fc6 weight as a lane row matching the [out | z] layout ---
    # fc6 input is cat([z, out]): rows [0, d_z) multiply z, rows [d_z, d_z+n_act) multiply out.
    w6_row = jnp.zeros((s2,), jnp.float32)
    w6_row = w6_row.at[:n_act].set(w6[d_z:, 0])
    w6_row = w6_row.at[n_act:n_act + d_z].set(w6[:d_z, 0])

    # --- pack: one bf16 weight slab + one f32 bias/row slab (2 DMAs total) ---
    w_slab = jnp.zeros((d_in_pad + s1, s1), jnp.bfloat16)
    w_slab = w_slab.at[:d_in_pad, :].set(w_a.astype(jnp.bfloat16))
    w_slab = w_slab.at[d_in_pad:, :s2].set(w_b.astype(jnp.bfloat16))

    bias_slab = jnp.zeros((8, s1), jnp.float32)
    bias_slab = bias_slab.at[0, :].set(b_a)
    bias_slab = bias_slab.at[1, :s2].set(b_b)
    bias_slab = bias_slab.at[2, :s2].set(w6_row)
    bias_slab = bias_slab.at[3, 0].set(b6[0])

    raw = {"w1": w1, "b1": b1, "w2": w2, "b2": b2, "w4": w4, "b4": b4,
           "w5": w5, "b5": b5, "w6": w6, "b6": b6}
    return {"w_slab": w_slab, "bias_slab": bias_slab, "raw": raw, "n_act": n_act}


def ou_noise(key, dim, mu=0.0, theta=0.15, sigma=0.2):
    # One deterministic Ornstein-Uhlenbeck step from a zero state
    # (replaces OUNoise.noise(); stateful evolution kept outside the kernel).
    state = jnp.zeros((1, dim), jnp.float32)
    dx = theta * (mu - state) + sigma * jax.random.normal(key, (1, dim), jnp.float32)
    return state + dx


def reference_forward(e, k, noise, raw):
    """Pure-JAX f32 reference mirroring the PyTorch forward."""
    x = jnp.maximum(e @ raw["w1"] + raw["b1"], 0.0)
    y = jnp.maximum(k @ raw["w2"] + raw["b2"], 0.0)
    out = jnp.concatenate([x, y], axis=-1) @ raw["w4"] + raw["b4"] + noise
    z = x @ raw["w5"] + raw["b5"]
    cpu = jax.nn.sigmoid(jnp.concatenate([z, out], axis=-1) @ raw["w6"] + raw["b6"])
    return jax.nn.softmax(out, axis=-1), cpu


# --------------------------------- main --------------------------------------
if __name__ == "__main__":
    neighbors_num = 7
    task_em_size = 8
    batch = 2

    key = jax.random.PRNGKey(0)
    k_params, k_e, k_k, k_noise = jax.random.split(key, 4)

    params = init_params(k_params, neighbors_num, task_em_size)
    n_act = params["n_act"]

    e = jax.random.normal(k_e, (batch, neighbors_num * 3 + 3), jnp.float32)
    kk = jax.random.normal(k_k, (batch, task_em_size), jnp.float32)
    noise = ou_noise(k_noise, n_act)

    probs, cpu_fre = ddpg_actor_forward(
        e, kk, noise, params["w_slab"], params["bias_slab"], n_act=n_act)
    jax.block_until_ready((probs, cpu_fre))

    # Pure-JAX reference (f32 weights; kernel uses bf16 on the MXU -> loose tol).
    ref_probs, ref_cpu = reference_forward(e, kk, noise, params["raw"])

    assert probs.shape == (batch, n_act)
    assert cpu_fre.shape == (batch, 1)
    # approx-reciprocal softmax: rows sum to 1 within EUP approximation error
    assert jnp.allclose(jnp.sum(probs, axis=-1), 1.0, atol=5e-3)
    assert bool(jnp.all((cpu_fre > 0.0) & (cpu_fre < 1.0)))
    assert jnp.allclose(probs, ref_probs, atol=5e-2)
    assert jnp.allclose(cpu_fre, ref_cpu, atol=5e-2)

    print("KERNEL_OK")
</pallas_src>

<mosaic_0001>
module attributes {stable_mosaic.version = 11 : i64} {
  func.func @ddpg_actor_kernel(%arg0: memref<2x32xf32, #tpu.memory_space<vmem>>, %arg1: memref<1x128xf32, #tpu.memory_space<vmem>>, %arg2: memref<288x256xbf16, #tpu.memory_space<vmem>>, %arg3: memref<8x256xf32, #tpu.memory_space<vmem>>, %arg4: memref<2x128xf32, #tpu.memory_space<vmem>>) attributes {dimension_semantics = [], scalar_prefetch = 0 : i64, scratch_operands = 0 : i64, tpu.core_type = #tpu.core_type<tc>} {
    %c0 = arith.constant 0 : index
    %c0_0 = arith.constant 0 : index
    %0 = vector.load %arg2[%c0, %c0_0] : memref<288x256xbf16, #tpu.memory_space<vmem>>, vector<32x256xbf16>
    %c32 = arith.constant 32 : index
    %c0_1 = arith.constant 0 : index
    %1 = vector.load %arg2[%c32, %c0_1] : memref<288x256xbf16, #tpu.memory_space<vmem>>, vector<256x128xbf16>
    %c0_2 = arith.constant 0 : index
    %c0_3 = arith.constant 0 : index
    %2 = vector.load %arg3[%c0_2, %c0_3] : memref<8x256xf32, #tpu.memory_space<vmem>>, vector<1x256xf32>
    %c1 = arith.constant 1 : index
    %c0_4 = arith.constant 0 : index
    %3 = vector.load %arg3[%c1, %c0_4] : memref<8x256xf32, #tpu.memory_space<vmem>>, vector<1x128xf32>
    %c2 = arith.constant 2 : index
    %c0_5 = arith.constant 0 : index
    %4 = vector.load %arg3[%c2, %c0_5] : memref<8x256xf32, #tpu.memory_space<vmem>>, vector<1x128xf32>
    %c3 = arith.constant 3 : index
    %c0_6 = arith.constant 0 : index
    %5 = vector.load %arg3[%c3, %c0_6] : memref<8x256xf32, #tpu.memory_space<vmem>>, vector<1x1xf32>
    %c0_7 = arith.constant 0 : index
    %c0_8 = arith.constant 0 : index
    %6 = vector.load %arg0[%c0_7, %c0_8] : memref<2x32xf32, #tpu.memory_space<vmem>>, vector<2x32xf32>
    %7 = arith.truncf %6 : vector<2x32xf32> to vector<2x32xbf16>
    %cst = arith.constant dense<0.000000e+00> : vector<2x256xf32>
    %8 = tpu.matmul %7, %0, %cst {dimension_numbers = #tpu.dot_dimension_numbers<[1], [0], [0], [1], [0, 0, 1, 1], [], []>} : vector<2x32xbf16>, vector<32x256xbf16>, vector<2x256xf32> -> vector<2x256xf32>
    %9 = vector.broadcast %2 : vector<1x256xf32> to vector<2x256xf32>
    %10 = arith.addf %8, %9 : vector<2x256xf32>
    %cst_9 = arith.constant 0.000000e+00 : f32
    %11 = vector.broadcast %cst_9 : f32 to vector<2x256xf32>
    %12 = arith.maximumf %10, %11 : vector<2x256xf32>
    %13 = arith.truncf %12 : vector<2x256xf32> to vector<2x256xbf16>
    %cst_10 = arith.constant dense<0.000000e+00> : vector<2x128xf32>
    %14 = tpu.matmul %13, %1, %cst_10 {dimension_numbers = #tpu.dot_dimension_numbers<[1], [0], [0], [1], [0, 0, 1, 1], [], []>} : vector<2x256xbf16>, vector<256x128xbf16>, vector<2x128xf32> -> vector<2x128xf32>
    %15 = vector.broadcast %3 : vector<1x128xf32> to vector<2x128xf32>
    %16 = arith.addf %14, %15 : vector<2x128xf32>
    %c0_11 = arith.constant 0 : index
    %c0_12 = arith.constant 0 : index
    %17 = vector.load %arg1[%c0_11, %c0_12] : memref<1x128xf32, #tpu.memory_space<vmem>>, vector<1x128xf32>
    %18 = vector.broadcast %17 : vector<1x128xf32> to vector<2x128xf32>
    %19 = arith.addf %16, %18 : vector<2x128xf32>
    %20 = vector.broadcast %4 : vector<1x128xf32> to vector<2x128xf32>
    %21 = arith.mulf %19, %20 : vector<2x128xf32>
    %cst_13 = arith.constant dense<0.000000e+00> : vector<2xf32>
    %22 = vector.multi_reduction <add>, %21, %cst_13 [1] : vector<2x128xf32> to vector<2xf32>
    %23 = vector.shape_cast %22 : vector<2xf32> to vector<2x1xf32>
    %24 = vector.broadcast %5 : vector<1x1xf32> to vector<2x1xf32>
    %25 = arith.addf %23, %24 : vector<2x1xf32>
    %26 = arith.negf %25 : vector<2x1xf32>
    %27 = math.exp %26 : vector<2x1xf32>
    %cst_14 = arith.constant 1.000000e+00 : f32
    %28 = vector.broadcast %cst_14 : f32 to vector<2x1xf32>
    %29 = arith.addf %28, %27 : vector<2x1xf32>
    %30 = arith.divf %28, %29 : vector<2x1xf32>
    %31 = tpu.iota {dimensions = array<i32: 1>} : vector<2x128xi32>
    %c8_i32 = arith.constant 8 : i32
    %32 = vector.broadcast %c8_i32 : i32 to vector<2x128xi32>
    %33 = arith.cmpi slt, %31, %32 : vector<2x128xi32>
    %cst_15 = arith.constant 0xFF800000 : f32
    %34 = vector.broadcast %cst_15 : f32 to vector<2x128xf32>
    %35 = arith.select %33, %19, %34 : vector<2x128xi1>, vector<2x128xf32>
    %cst_16 = arith.constant dense<0xFF800000> : vector<2xf32>
    %36 = vector.multi_reduction <maximumf>, %35, %cst_16 [1] : vector<2x128xf32> to vector<2xf32>
    %37 = vector.shape_cast %36 : vector<2xf32> to vector<2x1xf32>
    %38 = vector.broadcast %37 : vector<2x1xf32> to vector<2x128xf32>
    %39 = arith.subf %35, %38 : vector<2x128xf32>
    %40 = math.exp %39 : vector<2x128xf32>
    %cst_17 = arith.constant dense<0.000000e+00> : vector<2xf32>
    %41 = vector.multi_reduction <add>, %40, %cst_17 [1] : vector<2x128xf32> to vector<2xf32>
    %42 = vector.shape_cast %41 : vector<2xf32> to vector<2x1xf32>
    %43 = tpu.reciprocal %42 {approx = true} : vector<2x1xf32> -> vector<2x1xf32>
    %44 = vector.broadcast %43 : vector<2x1xf32> to vector<2x128xf32>
    %45 = arith.mulf %40, %44 : vector<2x128xf32>
    %c8_i32_18 = arith.constant 8 : i32
    %46 = vector.broadcast %c8_i32_18 : i32 to vector<2x128xi32>
    %47 = arith.cmpi eq, %31, %46 : vector<2x128xi32>
    %48 = vector.shape_cast %30 : vector<2x1xf32> to vector<2x1xf32>
    %49 = vector.broadcast %48 : vector<2x1xf32> to vector<2x128xf32>
    %50 = arith.select %47, %49, %45 : vector<2x128xi1>, vector<2x128xf32>
    %c0_19 = arith.constant 0 : index
    %c0_20 = arith.constant 0 : index
    %51 = vector.load %arg4[%c0_19, %c0_20] : memref<2x128xf32, #tpu.memory_space<vmem>>, vector<2x128xf32>
    tpu.vector_store %arg4[%c0_19, %c0_20], %50 {strides = array<i32>} : memref<2x128xf32, #tpu.memory_space<vmem>>, vector<2x128xf32>,
    return
  }
}

</mosaic_0001>

<bundles_post_ra>
// kernel: ddpg_actor_forward.1
= control target key start
LH: loop header
LB: loop body
LE: loop exit
PB: predicated region body
PF: predicated region fallthrough
CT: control target
= control target key end

     0   :  { %9 = vsyncpa [#allocation3], 0  ;;  %s443_s15 = smov [#allocation2]   ;;  %s509_s0 = inlined_call_operand.vmem [shape: f32[2,32], index: 0, kind: input, shape index: {}]   ;;  %s510_s1 = inlined_call_operand.vmem [shape: f32[1,128], index: 1, kind: input, shape index: {}]   ;;  %s511_s2 = inlined_call_operand.hbm [shape: bf16[288,256], index: 2, kind: input, shape index: {}]   ;;  %s512_s3 = inlined_call_operand.vmem [shape: f32[8,256], index: 3, kind: input, shape index: {}]   ;;  %s513_s4 = inlined_call_operand.vmem [shape: f32[2,128], index: 4, kind: output, shape index: {}]  }
   0x1   :  { %s19_s16 = sshll.u32 %s443_s15, 4  ;;  %s419_s19 = scalar_lea.hbm %s511_s2, 4608  ;;  %s20_s16 = int_to_ptr.vmem [resolvable:$true] %s19_s16 }
   0x2   :  { %p420_p0 = scmp.ne.s32.totalorder %s511_s2, %s419_s19  ;;  %p423_p1 = scmp.lt.u32.totalorder %s419_s19, %s511_s2 }
   0x4   :  { %p425_p2 = pnand %p423_p1, %p420_p0 }
   0x6   :  { %428 = shalt.err (!%p425_p2)
}
   0x7   :  { %s429_s24 = scalar_lea.vmem %s20_s16, 4608  ;;  %p434_p4 = scmp.lt.s32.totalorder %s20_s16, %s20_s16 }
   0x8   :  { %p430_p3 = scmp.ne.s32.totalorder %s20_s16, %s429_s24  ;;  %p435_p5 = scmp.lt.s32.totalorder %s429_s24, %s429_s24 }
   0xa   :  { %p436_p6 = por %p435_p5, %p434_p4 }
   0xc   :  { %p437_p7 = pnand %p436_p6, %p430_p3 }
   0xe   :  { %440 = shalt.err (!%p437_p7)
}
   0xf   :  { %s444_s25 = smov 128   ;;  %s445_s26 = smov 8  }
  0x10   :  { %25 = dma.hbm_to_vmem [thread:$0]  %s511_s2, 4608, %s20_s16, [#allocation3], %s444_s25, %s444_s25, %s445_s26  }
  0x11   :  { %441 = dma.done.wait [#allocation3], 4608  }
  0x12   :  { %442 = vsyncadd [#allocation3], 4294962688  ;;  %v446_v0 = vmov 0   ;;  %v389_v1 = vld [vmem:[#allocation2 + $0x4] ss:$8 sps:$4 sm:$0xff]   ;;  %vm105_vm0 = vcmask 261120   ;;  %v75_v23 = vlaneseq }
  0x13   :  { %141 = vmatprep.mubr.bf16.mxu0 %v446_v0  ;;  %387 = vset.pattern.permute.xlu1 %v446_v0  ;;  %v391_v2 = vld [vmem:[#allocation2] ss:$8 sps:$4 sm:$0xff]   ;;  %v392_v3 = vld [vmem:[#allocation2 + $0x14] ss:$8 sps:$4 sm:$0xff]   ;;  %v394_v4 = vld [vmem:[#allocation2 + $0x10] ss:$8 sps:$4 sm:$0xff]  }
  0x14   :  { %388 = vset.pattern.permute.xlu0 %v446_v0  ;;  %109 = vmatprep.subr.bf16.mxu0 %v389_v1  ;;  %v72_v5 = vld [vmem:[%s509_s0] sm:$0x3]  ;;  %v397_v8 = vld [vmem:[#allocation2 + $0xb0] ss:$8 sps:$4 sm:$0xff]   ;;  %v76_v24 = vshrl.u32 %v75_v23, 7  ;;  %v311_v43 = vand.u32 127, %v75_v23 }
  0x15   :  { %110 = vmatpush1.bf16.msra.mxu0 %v391_v2  ;;  %v395_v6 = vld [vmem:[#allocation2 + $0xa0] ss:$8 sps:$4 sm:$0xff]   ;;  %v73_v9 = vpack.c.bf16 %v72_v5, %v72_v5  ;;  %v398_v10 = vld [vmem:[#allocation2 + $0x30] ss:$8 sps:$4 sm:$0xff]   ;;  %vm299_vm2 = vcmask 1041408  }
  0x16   :  { %111 = vmatprep.subr.bf16.mxu0 %v392_v3  ;;  %v396_v7 = vld [vmem:[#allocation2 + $0x20] ss:$8 sps:$4 sm:$0xff]   ;;  %361 = vmatprep.subr.bf16.mxu1 %v395_v6  ;;  %v401_v13 = vld [vmem:[#allocation2 + $0xd0] ss:$8 sps:$4 sm:$0xff]   ;;  %v77_v25 = vsub.s32 0, %v76_v24  ;;  %v81_v27 = vsub.s32 1, %v76_v24 }
  0x17   :  { %362 = vmatpush3.bf16.msra.mxu1 %v396_v7  ;;  %v399_v11 = vld [vmem:[#allocation2 + $0xc0] ss:$8 sps:$4 sm:$0xff]   ;;  %v402_v14 = vld [vmem:[#allocation2 + $0x50] ss:$8 sps:$4 sm:$0xff]   ;;  %vm312_vm1 = vcmp.lt.s32.totalorder %v311_v43, 8  ;;  %vm325_vm3 = vcmp.eq.s32.totalorder %v311_v43, 8 }
  0x18   :  { %363 = vmatprep.subr.bf16.mxu1 %v397_v8  ;;  %v400_v12 = vld [vmem:[#allocation2 + $0x40] ss:$8 sps:$4 sm:$0xff]   ;;  %v405_v17 = vld [vmem:[#allocation2 + $0xf0] ss:$8 sps:$4 sm:$0xff]  }
  0x19   :  { %112 = vmatpush1.bf16.msra.mxu0 %v394_v4  ;;  %v403_v15 = vld [vmem:[#allocation2 + $0xe0] ss:$8 sps:$4 sm:$0xff]   ;;  %v406_v18 = vld [vmem:[#allocation2 + $0x70] ss:$8 sps:$4 sm:$0xff]  }
  0x1a   :  { %v404_v16 = vld [vmem:[#allocation2 + $0x60] ss:$8 sps:$4 sm:$0xff]   ;;  %v409_v21 = vld [vmem:[#allocation2 + $0x110] ss:$8 sps:$4 sm:$0xff]  }
  0x1b   :  { %364 = vmatpush3.bf16.msra.mxu1 %v398_v10  ;;  %v407_v19 = vld [vmem:[#allocation2 + $0x100] ss:$8 sps:$4 sm:$0xff]   ;;  %v410_v22 = vld [vmem:[#allocation2 + $0x90] ss:$8 sps:$4 sm:$0xff]  }
  0x1c   :  { %342 = vmatmul.mubr.msk.bf16.vlgmr.msra.gmra.mrb[0].mxu0 %vm105_vm0, %v73_v9  ;;  %365 = vmatprep.subr.bf16.mxu1 %v399_v11  ;;  %v408_v20 = vld [vmem:[#allocation2 + $0x80] ss:$8 sps:$4 sm:$0xff]  }
  0x1d   :  { %v68_v26 = vld [vmem:[%s512_s3] ss:$8 sm:$0x3]  ;;  %v69_v41 = vld [vmem:[%s512_s3 + $0x1] ss:$0 sm:$0xff] }
  0x1e   :  { %v78_v28 = vrot.slane %v68_v26, %v77_v25  ;;  %v82_v29 = vrot.slane %v68_v26, %v81_v27  ;;  %v359_v47 = vld [vmem:[%s510_s1] ss:$0 sm:$0xff]  ;;  %v70_v50 = vld [vmem:[%s512_s3 + $0x2] ss:$0 sm:$0xff]  ;;  %v71_v57 = vld [vmem:[%s512_s3 + $0x3] ss:$0 sm:$0xff] }
  0x1f   :  { %366 = vmatpush3.bf16.msra.mxu1 %v400_v12 }
  0x20   :  { %367 = vmatprep.subr.bf16.mxu1 %v401_v13 }
  0x23   :  { %368 = vmatpush3.bf16.msra.mxu1 %v402_v14 }
  0x24   :  { %369 = vmatprep.subr.bf16.mxu1 %v403_v15 }
  0x27   :  { %370 = vmatpush3.bf16.msra.mxu1 %v404_v16 }
  0x28   :  { %371 = vmatprep.subr.bf16.mxu1 %v405_v17 }
  0x2b   :  { %372 = vmatpush3.bf16.msra.mxu1 %v406_v18 }
  0x2c   :  { %373 = vmatprep.subr.bf16.mxu1 %v407_v19 }
  0x2f   :  { %374 = vmatpush3.bf16.msra.mxu1 %v408_v20 }
  0x30   :  { %375 = vmatprep.subr.bf16.mxu1 %v409_v21 }
  0x33   :  { %376 = vmatpush3.bf16.msra.mxu1 %v410_v22 }
  0xef   :  { %v143_v30 = vpop.f32.mrb[0].mxu0 }
  0xf0   :  { %v144_v31 = vadd.f32 %v143_v30, %v78_v28  ;;  %v145_v32 = vpop.f32.mrb[1].mxu0 }
  0xf1   :  { %v146_v33 = vadd.f32 %v145_v32, %v82_v29  ;;  %v147_v34 = vpop.f32.mrb[2].mxu0 }
  0xf2   :  { %v150_v35 = vmax.f32 %v144_v31, 0.0  ;;  %v148_v36 = vpop.f32.mrb[3].mxu0 }
  0xf3   :  { %v151_v37 = vmax.f32 %v146_v33, 0.0 }
  0xf4   :  { %v152_v39 = vpack.c.bf16 %v150_v35, %v150_v35 }
  0xf5   :  { %v153_v38 = vpack.c.bf16 %v151_v37, %v151_v37 }
  0xf7   :  { %282 = vmatprep.mubr.bf16.mxu1 %v153_v38 }
  0xf8   :  { %283 = vmatmul.mubr.bf16.vlgmr.msra.gmra.mrb[0].mxu1 %v152_v39 }
 0x1cb   :  { %v377_v40 = vpop.f32.mrb[0].mxu1 }
 0x1cc   :  { %v378_v42 = vpop.f32.mrb[1].mxu1 }
 0x1cd   :  { %v379_v44 = vadd.f32 %v378_v42, %v377_v40  ;;  %v380_v45 = vpop.f32.mrb[2].mxu1 }
 0x1ce   :  { %v381_v46 = vpop.f32.mrb[3].mxu1 }
 0x1cf   :  { %v285_v48 = vadd.f32 %v379_v44, %v69_v41 }
 0x1d1   :  { %v297_v49 = vadd.f32 %v359_v47, %v285_v48 }
 0x1d3   :  { %v313_v51 = vsel %vm312_vm1, %v297_v49, -inf  ;;  %v298_v53 = vmul.f32 %v297_v49, %v70_v50 }
 0x1d4   :  { %v314_v52 = vsel %vm299_vm2, %v313_v51, -inf }
 0x1d5   :  { %315 = vmax.xlane.f32.xlu0 %v314_v52  ;;  %v300_v54 = vsel %vm299_vm2, %v298_v53, 0.0 }
 0x1d9   :  { %301 = vadd.xlane.f32.xlu0 %v300_v54 }
 0x262   :  { %v316_v55 = vpop.xlane.xlu0 %315 }
 0x263   :  { %v317_v56 = vsub.f32 %v313_v51, %v316_v55 }
 0x265   :  { %v318_v58 = vmul.f32 1.442695, %v317_v56 }
 0x266   :  { %v302_v59 = vpop.xlane.xlu0 %301 }
 0x267   :  { %411 = vpow2.f32 %v318_v58  ;;  %v303_v60 = vadd.f32 %v302_v59, %v71_v57 }
 0x269   :  { %v360_v61 = vmul.f32 -1.442695, %v303_v60 }
 0x26b   :  { %413 = vpow2.f32 %v360_v61 }
 0x271   :  { %v412_v62 = vpop.eup %411 }
 0x272   :  { %v320_v63 = vsel %vm299_vm2, %v412_v62, 0.0 }
 0x273   :  { %321 = vadd.xlane.f32.xlu1 %v320_v63 }
 0x275   :  { %v414_v0 = vpop.eup %413 }
 0x276   :  { %v307_v1 = vadd.f32 1.0, %v414_v0 }
 0x278   :  { %415 = vrcp.f32 %v307_v1 }
 0x282   :  { %v416_v2 = vpop.eup %415 }
 0x284   :  { %328 = vperm.xlu1 %387, %v416_v2  }
 0x300   :  { %v322_v3 = vpop.xlane.xlu1 %321 }
 0x301   :  { %417 = vrcp.f32 %v322_v3 }
 0x304   :  { %v329_v6 = vpop.permute.xlu1 %328 }
 0x30b   :  { %v418_v4 = vpop.eup %417 }
 0x30c   :  { %v324_v5 = vmul.f32 %v418_v4, %v412_v62 }
 0x30e   :  { %v331_v7 = vsel %vm325_vm3, %v329_v6, %v324_v5 }
 0x30f   :  { %332 = vst [vmem:[%s513_s4] sm:$0x3] %v331_v7 }
 0x310   :  { %337 = vsyncpa [#allocation3], 1 }

</bundles_post_ra>
